<compile_context>
chip_gen: v5e
topology: v5e:2x2
jax: 0.10.0
libtpu: 0.0.40
codegen_flags: <defaults>
</compile_context>

<pallas_src>
import jax
import jax.numpy as jnp
from jax.experimental import pallas as pl
from jax.experimental.pallas import tpu as pltpu

N_REC_PE = 4                      # PEMLP:     1 + len(hidden_dims) PELinear layers
N_ERR_PE = 2                      # RealPEMLP: len(hidden_dims) - 1 PELinear layers
N_PE = 2 * (N_REC_PE + N_ERR_PE)  # 12 packed weight / bias rows


# ----------------------------------------------------------------------------
# Pallas kernel: fused forward of both branches of QECModel.
# ----------------------------------------------------------------------------
def qec_kernel(
    pe_b_ref,             # SMEM (12,)   packed scalar complex PE biases
    x_ref,                # (bb, M)      real measurements (batch tile)
    pe_w_ref,             # (12, M)      packed PE weight vectors
    fin_w_ref,            # (2, M, 2S)   [ [fwr | fwi], [-fwi | fwr] ]
    fin_b_ref,            # (1, 2S)      [fbr | fbi]
    lin1_w_ref,           # (2M, H)
    lin1_b_ref,           # (1, H)
    lin2_w_ref,           # (H, Q)
    lin2_b_ref,           # (1, Q)
    rec_ref,              # out (bb, 2S) [rec_real | rec_imag]
    syn_ref,              # out (bb, Q)
):
    f32 = jnp.float32
    x = x_ref[...]                 # (bb, M) purely real input
    M = x.shape[-1]
    pw = pe_w_ref[...]             # (12, M)

    # PELinear with sym_W[i,j] = w[i] + conj(w[j]):
    #   x @ sym_W = (x . w) broadcast over lanes  +  rowsum(x) * conj(w)
    def pe_first(h, wr, wi, br, bi):
        # imaginary input part is exactly zero for layer 0 of both branches
        s_r = jnp.sum(h * wr, axis=-1, keepdims=True)        # Re(x.w)
        s_i = jnp.sum(h * wi, axis=-1, keepdims=True)        # Im(x.w)
        t_r = jnp.sum(h, axis=-1, keepdims=True)             # Re(rowsum)
        o_r = s_r + t_r * wr + br
        o_i = s_i - t_r * wi + bi
        return jnp.maximum(o_r, 0.0), jnp.maximum(o_i, 0.0)  # ComplexReLU

    def pe_layer(hr, hi, wr, wi, br, bi):
        s_r = jnp.sum(hr * wr - hi * wi, axis=-1, keepdims=True)
        s_i = jnp.sum(hr * wi + hi * wr, axis=-1, keepdims=True)
        t_r = jnp.sum(hr, axis=-1, keepdims=True)
        t_i = jnp.sum(hi, axis=-1, keepdims=True)
        o_r = s_r + t_r * wr + t_i * wi + br
        o_i = s_i + t_i * wr - t_r * wi + bi
        return jnp.maximum(o_r, 0.0), jnp.maximum(o_i, 0.0)

    # ---- reconstruction branch (PEMLP) ------------------------------------
    # weight rows 0..3 = rec_wr, 4..7 = rec_wi; biases laid out the same way.
    hr, hi = pe_first(x, pw[0:1], pw[4:5], pe_b_ref[0], pe_b_ref[4])
    for l in range(1, N_REC_PE):
        hr, hi = pe_layer(hr, hi, pw[l:l + 1], pw[4 + l:5 + l],
                          pe_b_ref[l], pe_b_ref[4 + l])
    # final complex linear, packed so [real | imag] comes out lane-contiguous
    rec_ref[...] = (jnp.dot(hr, fin_w_ref[0], preferred_element_type=f32)
                    + jnp.dot(hi, fin_w_ref[1], preferred_element_type=f32)
                    + fin_b_ref[...])

    # ---- error-detection branch (RealPEMLP) --------------------------------
    # weight rows 8..9 = err_wr, 10..11 = err_wi.
    hr, hi = pe_first(x, pw[8:9], pw[10:11], pe_b_ref[8], pe_b_ref[10])
    for l in range(1, N_ERR_PE):
        hr, hi = pe_layer(hr, hi, pw[8 + l:9 + l], pw[10 + l:11 + l],
                          pe_b_ref[8 + l], pe_b_ref[10 + l])
    # Linear(2M -> H) without in-kernel lane concat: split W1 into real/imag halves
    w1 = lin1_w_ref[...]
    z = jnp.maximum(jnp.dot(hr, w1[:M], preferred_element_type=f32)
                    + jnp.dot(hi, w1[M:], preferred_element_type=f32)
                    + lin1_b_ref[...], 0.0)
    syn_ref[...] = (jnp.dot(z, lin2_w_ref[...], preferred_element_type=f32)
                    + lin2_b_ref[...])


# ----------------------------------------------------------------------------
# Parameter construction (deterministic, mirrors the PyTorch __init__ shapes).
# ----------------------------------------------------------------------------
def init_params(key, measurement_dim, n_qubits, hidden_dims):
    assert all(h == measurement_dim for h in hidden_dims), \
        "original module only runs when hidden dims == measurement_dim"
    M = measurement_dim
    S = 2 ** n_qubits
    H = hidden_dims[-1]
    keys = iter(jax.random.split(key, 16))

    def randn(shape, scale):
        return jax.random.normal(next(keys), shape, jnp.float32) * scale

    sc = 1.0 / jnp.sqrt(jnp.float32(M))
    p = {}
    # PEMLP (reconstruction): 4 PELinear layers, each a length-M complex
    # weight vector + scalar complex bias.
    p["rec_wr"] = randn((N_REC_PE, M), sc)
    p["rec_wi"] = randn((N_REC_PE, M), sc)
    p["rec_br"] = randn((N_REC_PE,), sc)
    p["rec_bi"] = randn((N_REC_PE,), sc)
    # PEMLP final complex linear (M -> state_dim)
    p["fin_wr"] = randn((M, S), sc)
    p["fin_wi"] = randn((M, S), sc)
    p["fin_br"] = randn((S,), sc)
    p["fin_bi"] = randn((S,), sc)
    # RealPEMLP: 2 PELinear layers
    p["err_wr"] = randn((N_ERR_PE, M), sc)
    p["err_wi"] = randn((N_ERR_PE, M), sc)
    p["err_br"] = randn((N_ERR_PE,), sc)
    p["err_bi"] = randn((N_ERR_PE,), sc)
    # RealPEMLP final real layers: Linear(2M -> H), Linear(H -> n_qubits)
    p["lin1_w"] = randn((2 * M, H), 1.0 / jnp.sqrt(jnp.float32(2 * M)))
    p["lin1_b"] = randn((H,), 1.0 / jnp.sqrt(jnp.float32(2 * M)))
    p["lin2_w"] = randn((H, n_qubits), 1.0 / jnp.sqrt(jnp.float32(H)))
    p["lin2_b"] = randn((n_qubits,), 1.0 / jnp.sqrt(jnp.float32(H)))
    return p


# ----------------------------------------------------------------------------
# Wrapper: operand packing + pallas_call.
# ----------------------------------------------------------------------------
def qec_forward(measurements, params, n_qubits):
    B, M = measurements.shape
    S = 2 ** n_qubits
    Q = n_qubits
    H = params["lin1_w"].shape[1]

    # Pack all PE weight vectors / scalar biases:
    #   rows 0..3 rec_wr, 4..7 rec_wi, 8..9 err_wr, 10..11 err_wi
    pe_w = jnp.concatenate([params["rec_wr"], params["rec_wi"],
                            params["err_wr"], params["err_wi"]], axis=0)   # (12, M)
    pe_b = jnp.concatenate([params["rec_br"], params["rec_bi"],
                            params["err_br"], params["err_bi"]], axis=0)   # (12,)

    # Final complex linear packed so rec = hr @ A + hi @ B gives [real | imag].
    fwr, fwi = params["fin_wr"], params["fin_wi"]
    fin_w = jnp.stack([jnp.concatenate([fwr, fwi], axis=1),
                       jnp.concatenate([-fwi, fwr], axis=1)], axis=0)      # (2, M, 2S)
    fin_b = jnp.concatenate([params["fin_br"], params["fin_bi"]])[None, :] # (1, 2S)

    lin1_b = params["lin1_b"][None, :]
    lin2_b = params["lin2_b"][None, :]

    # Batch grid (parallel -> second TensorCore on v7x once batch grows).
    bb = B if B <= 256 else 256
    grid = (pl.cdiv(B, bb),)

    smem = pl.BlockSpec(memory_space=pltpu.MemorySpace.SMEM)

    def const(shape):
        return pl.BlockSpec(shape, lambda i, _s=shape: (0,) * len(_s))

    def batched(shape):
        return pl.BlockSpec(shape, lambda i, _s=shape: (i,) + (0,) * (len(_s) - 1))

    out_shapes = (
        jax.ShapeDtypeStruct((B, 2 * S), jnp.float32),   # [rec_real | rec_imag]
        jax.ShapeDtypeStruct((B, Q), jnp.float32),       # error syndrome
    )

    rec_ri, syn = pl.pallas_call(
        qec_kernel,
        out_shape=out_shapes,
        grid=grid,
        in_specs=[smem,
                  batched((bb, M)),
                  const((N_PE, M)),
                  const((2, M, 2 * S)),
                  const((1, 2 * S)),
                  const((2 * M, H)),
                  const((1, H)),
                  const((H, Q)),
                  const((1, Q))],
        out_specs=(batched((bb, 2 * S)), batched((bb, Q))),
        compiler_params=pltpu.CompilerParams(dimension_semantics=("parallel",)),
    )(pe_b, measurements, pe_w, fin_w, fin_b,
      params["lin1_w"], lin1_b, params["lin2_w"], lin2_b)

    reconstructed_state = rec_ri[:, :S] + 1j * rec_ri[:, S:]   # complex64 (B, 2**n)
    return reconstructed_state, syn


# ----------------------------------------------------------------------------
# Pure-JAX reference (eval-mode forward, explicit symmetric complex weights).
# ----------------------------------------------------------------------------
def qec_reference(measurements, params, n_qubits):
    xc = measurements.astype(jnp.complex64)

    def pe_branch(xc, wr, wi, br, bi, n_layers):
        h = xc
        for l in range(n_layers):
            w = wr[l] + 1j * wi[l]
            sym = jnp.outer(w, jnp.ones_like(w))
            sym = sym + sym.T.conj()
            h = h @ sym + (br[l] + 1j * bi[l])
            h = jnp.maximum(h.real, 0.0) + 1j * jnp.maximum(h.imag, 0.0)
        return h

    h = pe_branch(xc, params["rec_wr"], params["rec_wi"],
                  params["rec_br"], params["rec_bi"], N_REC_PE)
    fin = params["fin_wr"] + 1j * params["fin_wi"]
    rec = h @ fin + (params["fin_br"] + 1j * params["fin_bi"])

    h = pe_branch(xc, params["err_wr"], params["err_wi"],
                  params["err_br"], params["err_bi"], N_ERR_PE)
    cat = jnp.concatenate([h.real, h.imag], axis=-1)
    z = jnp.maximum(cat @ params["lin1_w"] + params["lin1_b"], 0.0)
    syn = z @ params["lin2_w"] + params["lin2_b"]
    return rec, syn


if __name__ == "__main__":
    n_qubits = 3
    measurement_dim = 32
    hidden_dims = [32, 32, 32]
    batch = 8                       # sublane-aligned small batch

    key = jax.random.PRNGKey(0)
    k_x, k_p = jax.random.split(key)
    measurements = jax.random.normal(k_x, (batch, measurement_dim), jnp.float32)
    params = init_params(k_p, measurement_dim, n_qubits, hidden_dims)

    rec, syn = qec_forward(measurements, params, n_qubits)
    rec = jax.block_until_ready(rec)
    syn = jax.block_until_ready(syn)

    rec_ref, syn_ref = qec_reference(measurements, params, n_qubits)
    assert rec.shape == (batch, 2 ** n_qubits) and rec.dtype == jnp.complex64
    assert syn.shape == (batch, n_qubits)
    assert jnp.allclose(rec, rec_ref, atol=1e-3, rtol=1e-3)
    assert jnp.allclose(syn, syn_ref, atol=1e-3, rtol=1e-3)

    print("KERNEL_OK")
</pallas_src>

<mosaic_0001>
module attributes {stable_mosaic.version = 11 : i64} {
  func.func @qec_kernel(%arg0: i32, %arg1: memref<12xf32, #tpu.memory_space<smem>>, %arg2: memref<8x32xf32, #tpu.memory_space<vmem>>, %arg3: memref<12x32xf32, #tpu.memory_space<vmem>>, %arg4: memref<2x32x16xf32, #tpu.memory_space<vmem>>, %arg5: memref<1x16xf32, #tpu.memory_space<vmem>>, %arg6: memref<64x32xf32, #tpu.memory_space<vmem>>, %arg7: memref<1x32xf32, #tpu.memory_space<vmem>>, %arg8: memref<32x3xf32, #tpu.memory_space<vmem>>, %arg9: memref<1x3xf32, #tpu.memory_space<vmem>>, %arg10: memref<8x16xf32, #tpu.memory_space<vmem>>, %arg11: memref<8x3xf32, #tpu.memory_space<vmem>>) attributes {dimension_semantics = [#tpu.dimension_semantics<parallel>], iteration_bounds = array<i64: 1>, scalar_prefetch = 0 : i64, scratch_operands = 0 : i64, tpu.core_type = #tpu.core_type<tc>, window_params = [{transform_indices = @transform_0, window_bounds = array<i64: 12>}, {transform_indices = @transform_1, window_bounds = array<i64: 8, 32>}, {pipeline_mode = #tpu.pipeline_mode<synchronous>, transform_indices = @transform_2, window_bounds = array<i64: 12, 32>}, {pipeline_mode = #tpu.pipeline_mode<synchronous>, transform_indices = @transform_3, window_bounds = array<i64: 2, 32, 16>}, {pipeline_mode = #tpu.pipeline_mode<synchronous>, transform_indices = @transform_4, window_bounds = array<i64: 1, 16>}, {pipeline_mode = #tpu.pipeline_mode<synchronous>, transform_indices = @transform_5, window_bounds = array<i64: 64, 32>}, {pipeline_mode = #tpu.pipeline_mode<synchronous>, transform_indices = @transform_6, window_bounds = array<i64: 1, 32>}, {pipeline_mode = #tpu.pipeline_mode<synchronous>, transform_indices = @transform_7, window_bounds = array<i64: 32, 3>}, {pipeline_mode = #tpu.pipeline_mode<synchronous>, transform_indices = @transform_8, window_bounds = array<i64: 1, 3>}, {transform_indices = @transform_9, window_bounds = array<i64: 8, 16>}, {transform_indices = @transform_10, window_bounds = array<i64: 8, 3>}]} {
    %c0 = arith.constant 0 : index
    %c0_0 = arith.constant 0 : index
    %0 = vector.load %arg2[%c0, %c0_0] : memref<8x32xf32, #tpu.memory_space<vmem>>, vector<8x32xf32>
    %c0_1 = arith.constant 0 : index
    %c0_2 = arith.constant 0 : index
    %1 = vector.load %arg3[%c0_1, %c0_2] : memref<12x32xf32, #tpu.memory_space<vmem>>, vector<12x32xf32>
    %2 = vector.extract_strided_slice %1 {offsets = [0, 0], sizes = [1, 32], strides = [1, 1]} : vector<12x32xf32> to vector<1x32xf32>
    %3 = vector.extract_strided_slice %1 {offsets = [4, 0], sizes = [1, 32], strides = [1, 1]} : vector<12x32xf32> to vector<1x32xf32>
    %c0_3 = arith.constant 0 : index
    %4 = memref.load %arg1[%c0_3] : memref<12xf32, #tpu.memory_space<smem>>
    %c4 = arith.constant 4 : index
    %5 = memref.load %arg1[%c4] : memref<12xf32, #tpu.memory_space<smem>>
    %6 = vector.broadcast %2 : vector<1x32xf32> to vector<8x32xf32>
    %7 = arith.mulf %0, %6 : vector<8x32xf32>
    %cst = arith.constant dense<0.000000e+00> : vector<8xf32>
    %8 = vector.multi_reduction <add>, %7, %cst [1] : vector<8x32xf32> to vector<8xf32>
    %9 = vector.shape_cast %8 : vector<8xf32> to vector<8x1xf32>
    %10 = vector.broadcast %3 : vector<1x32xf32> to vector<8x32xf32>
    %11 = arith.mulf %0, %10 : vector<8x32xf32>
    %cst_4 = arith.constant dense<0.000000e+00> : vector<8xf32>
    %12 = vector.multi_reduction <add>, %11, %cst_4 [1] : vector<8x32xf32> to vector<8xf32>
    %13 = vector.shape_cast %12 : vector<8xf32> to vector<8x1xf32>
    %cst_5 = arith.constant dense<0.000000e+00> : vector<8xf32>
    %14 = vector.multi_reduction <add>, %0, %cst_5 [1] : vector<8x32xf32> to vector<8xf32>
    %15 = vector.shape_cast %14 : vector<8xf32> to vector<8x1xf32>
    %16 = vector.broadcast %15 : vector<8x1xf32> to vector<8x32xf32>
    %17 = vector.broadcast %2 : vector<1x32xf32> to vector<8x32xf32>
    %18 = arith.mulf %16, %17 : vector<8x32xf32>
    %19 = vector.broadcast %9 : vector<8x1xf32> to vector<8x32xf32>
    %20 = arith.addf %19, %18 : vector<8x32xf32>
    %21 = vector.broadcast %4 : f32 to vector<8x32xf32>
    %22 = arith.addf %20, %21 : vector<8x32xf32>
    %23 = vector.broadcast %15 : vector<8x1xf32> to vector<8x32xf32>
    %24 = vector.broadcast %3 : vector<1x32xf32> to vector<8x32xf32>
    %25 = arith.mulf %23, %24 : vector<8x32xf32>
    %26 = vector.broadcast %13 : vector<8x1xf32> to vector<8x32xf32>
    %27 = arith.subf %26, %25 : vector<8x32xf32>
    %28 = vector.broadcast %5 : f32 to vector<8x32xf32>
    %29 = arith.addf %27, %28 : vector<8x32xf32>
    %cst_6 = arith.constant 0.000000e+00 : f32
    %30 = vector.broadcast %cst_6 : f32 to vector<8x32xf32>
    %31 = arith.maximumf %22, %30 : vector<8x32xf32>
    %cst_7 = arith.constant 0.000000e+00 : f32
    %32 = vector.broadcast %cst_7 : f32 to vector<8x32xf32>
    %33 = arith.maximumf %29, %32 : vector<8x32xf32>
    %34 = vector.extract_strided_slice %1 {offsets = [1, 0], sizes = [1, 32], strides = [1, 1]} : vector<12x32xf32> to vector<1x32xf32>
    %35 = vector.extract_strided_slice %1 {offsets = [5, 0], sizes = [1, 32], strides = [1, 1]} : vector<12x32xf32> to vector<1x32xf32>
    %c1 = arith.constant 1 : index
    %36 = memref.load %arg1[%c1] : memref<12xf32, #tpu.memory_space<smem>>
    %c5 = arith.constant 5 : index
    %37 = memref.load %arg1[%c5] : memref<12xf32, #tpu.memory_space<smem>>
    %38 = vector.broadcast %34 : vector<1x32xf32> to vector<8x32xf32>
    %39 = arith.mulf %31, %38 : vector<8x32xf32>
    %40 = vector.broadcast %35 : vector<1x32xf32> to vector<8x32xf32>
    %41 = arith.mulf %33, %40 : vector<8x32xf32>
    %42 = arith.subf %39, %41 : vector<8x32xf32>
    %cst_8 = arith.constant dense<0.000000e+00> : vector<8xf32>
    %43 = vector.multi_reduction <add>, %42, %cst_8 [1] : vector<8x32xf32> to vector<8xf32>
    %44 = vector.shape_cast %43 : vector<8xf32> to vector<8x1xf32>
    %45 = vector.broadcast %35 : vector<1x32xf32> to vector<8x32xf32>
    %46 = arith.mulf %31, %45 : vector<8x32xf32>
    %47 = vector.broadcast %34 : vector<1x32xf32> to vector<8x32xf32>
    %48 = arith.mulf %33, %47 : vector<8x32xf32>
    %49 = arith.addf %46, %48 : vector<8x32xf32>
    %cst_9 = arith.constant dense<0.000000e+00> : vector<8xf32>
    %50 = vector.multi_reduction <add>, %49, %cst_9 [1] : vector<8x32xf32> to vector<8xf32>
    %51 = vector.shape_cast %50 : vector<8xf32> to vector<8x1xf32>
    %cst_10 = arith.constant dense<0.000000e+00> : vector<8xf32>
    %52 = vector.multi_reduction <add>, %31, %cst_10 [1] : vector<8x32xf32> to vector<8xf32>
    %53 = vector.shape_cast %52 : vector<8xf32> to vector<8x1xf32>
    %cst_11 = arith.constant dense<0.000000e+00> : vector<8xf32>
    %54 = vector.multi_reduction <add>, %33, %cst_11 [1] : vector<8x32xf32> to vector<8xf32>
    %55 = vector.shape_cast %54 : vector<8xf32> to vector<8x1xf32>
    %56 = vector.broadcast %53 : vector<8x1xf32> to vector<8x32xf32>
    %57 = vector.broadcast %34 : vector<1x32xf32> to vector<8x32xf32>
    %58 = arith.mulf %56, %57 : vector<8x32xf32>
    %59 = vector.broadcast %44 : vector<8x1xf32> to vector<8x32xf32>
    %60 = arith.addf %59, %58 : vector<8x32xf32>
    %61 = vector.broadcast %55 : vector<8x1xf32> to vector<8x32xf32>
    %62 = vector.broadcast %35 : vector<1x32xf32> to vector<8x32xf32>
    %63 = arith.mulf %61, %62 : vector<8x32xf32>
    %64 = arith.addf %60, %63 : vector<8x32xf32>
    %65 = vector.broadcast %36 : f32 to vector<8x32xf32>
    %66 = arith.addf %64, %65 : vector<8x32xf32>
    %67 = vector.broadcast %55 : vector<8x1xf32> to vector<8x32xf32>
    %68 = vector.broadcast %34 : vector<1x32xf32> to vector<8x32xf32>
    %69 = arith.mulf %67, %68 : vector<8x32xf32>
    %70 = vector.broadcast %51 : vector<8x1xf32> to vector<8x32xf32>
    %71 = arith.addf %70, %69 : vector<8x32xf32>
    %72 = vector.broadcast %53 : vector<8x1xf32> to vector<8x32xf32>
    %73 = vector.broadcast %35 : vector<1x32xf32> to vector<8x32xf32>
    %74 = arith.mulf %72, %73 : vector<8x32xf32>
    %75 = arith.subf %71, %74 : vector<8x32xf32>
    %76 = vector.broadcast %37 : f32 to vector<8x32xf32>
    %77 = arith.addf %75, %76 : vector<8x32xf32>
    %cst_12 = arith.constant 0.000000e+00 : f32
    %78 = vector.broadcast %cst_12 : f32 to vector<8x32xf32>
    %79 = arith.maximumf %66, %78 : vector<8x32xf32>
    %cst_13 = arith.constant 0.000000e+00 : f32
    %80 = vector.broadcast %cst_13 : f32 to vector<8x32xf32>
    %81 = arith.maximumf %77, %80 : vector<8x32xf32>
    %82 = vector.extract_strided_slice %1 {offsets = [2, 0], sizes = [1, 32], strides = [1, 1]} : vector<12x32xf32> to vector<1x32xf32>
    %83 = vector.extract_strided_slice %1 {offsets = [6, 0], sizes = [1, 32], strides = [1, 1]} : vector<12x32xf32> to vector<1x32xf32>
    %c2 = arith.constant 2 : index
    %84 = memref.load %arg1[%c2] : memref<12xf32, #tpu.memory_space<smem>>
    %c6 = arith.constant 6 : index
    %85 = memref.load %arg1[%c6] : memref<12xf32, #tpu.memory_space<smem>>
    %86 = vector.broadcast %82 : vector<1x32xf32> to vector<8x32xf32>
    %87 = arith.mulf %79, %86 : vector<8x32xf32>
    %88 = vector.broadcast %83 : vector<1x32xf32> to vector<8x32xf32>
    %89 = arith.mulf %81, %88 : vector<8x32xf32>
    %90 = arith.subf %87, %89 : vector<8x32xf32>
    %cst_14 = arith.constant dense<0.000000e+00> : vector<8xf32>
    %91 = vector.multi_reduction <add>, %90, %cst_14 [1] : vector<8x32xf32> to vector<8xf32>
    %92 = vector.shape_cast %91 : vector<8xf32> to vector<8x1xf32>
    %93 = vector.broadcast %83 : vector<1x32xf32> to vector<8x32xf32>
    %94 = arith.mulf %79, %93 : vector<8x32xf32>
    %95 = vector.broadcast %82 : vector<1x32xf32> to vector<8x32xf32>
    %96 = arith.mulf %81, %95 : vector<8x32xf32>
    %97 = arith.addf %94, %96 : vector<8x32xf32>
    %cst_15 = arith.constant dense<0.000000e+00> : vector<8xf32>
    %98 = vector.multi_reduction <add>, %97, %cst_15 [1] : vector<8x32xf32> to vector<8xf32>
    %99 = vector.shape_cast %98 : vector<8xf32> to vector<8x1xf32>
    %cst_16 = arith.constant dense<0.000000e+00> : vector<8xf32>
    %100 = vector.multi_reduction <add>, %79, %cst_16 [1] : vector<8x32xf32> to vector<8xf32>
    %101 = vector.shape_cast %100 : vector<8xf32> to vector<8x1xf32>
    %cst_17 = arith.constant dense<0.000000e+00> : vector<8xf32>
    %102 = vector.multi_reduction <add>, %81, %cst_17 [1] : vector<8x32xf32> to vector<8xf32>
    %103 = vector.shape_cast %102 : vector<8xf32> to vector<8x1xf32>
    %104 = vector.broadcast %101 : vector<8x1xf32> to vector<8x32xf32>
    %105 = vector.broadcast %82 : vector<1x32xf32> to vector<8x32xf32>
    %106 = arith.mulf %104, %105 : vector<8x32xf32>
    %107 = vector.broadcast %92 : vector<8x1xf32> to vector<8x32xf32>
    %108 = arith.addf %107, %106 : vector<8x32xf32>
    %109 = vector.broadcast %103 : vector<8x1xf32> to vector<8x32xf32>
    %110 = vector.broadcast %83 : vector<1x32xf32> to vector<8x32xf32>
    %111 = arith.mulf %109, %110 : vector<8x32xf32>
    %112 = arith.addf %108, %111 : vector<8x32xf32>
    %113 = vector.broadcast %84 : f32 to vector<8x32xf32>
    %114 = arith.addf %112, %113 : vector<8x32xf32>
    %115 = vector.broadcast %103 : vector<8x1xf32> to vector<8x32xf32>
    %116 = vector.broadcast %82 : vector<1x32xf32> to vector<8x32xf32>
    %117 = arith.mulf %115, %116 : vector<8x32xf32>
    %118 = vector.broadcast %99 : vector<8x1xf32> to vector<8x32xf32>
    %119 = arith.addf %118, %117 : vector<8x32xf32>
    %120 = vector.broadcast %101 : vector<8x1xf32> to vector<8x32xf32>
    %121 = vector.broadcast %83 : vector<1x32xf32> to vector<8x32xf32>
    %122 = arith.mulf %120, %121 : vector<8x32xf32>
    %123 = arith.subf %119, %122 : vector<8x32xf32>
    %124 = vector.broadcast %85 : f32 to vector<8x32xf32>
    %125 = arith.addf %123, %124 : vector<8x32xf32>
    %cst_18 = arith.constant 0.000000e+00 : f32
    %126 = vector.broadcast %cst_18 : f32 to vector<8x32xf32>
    %127 = arith.maximumf %114, %126 : vector<8x32xf32>
    %cst_19 = arith.constant 0.000000e+00 : f32
    %128 = vector.broadcast %cst_19 : f32 to vector<8x32xf32>
    %129 = arith.maximumf %125, %128 : vector<8x32xf32>
    %130 = vector.extract_strided_slice %1 {offsets = [3, 0], sizes = [1, 32], strides = [1, 1]} : vector<12x32xf32> to vector<1x32xf32>
    %131 = vector.extract_strided_slice %1 {offsets = [7, 0], sizes = [1, 32], strides = [1, 1]} : vector<12x32xf32> to vector<1x32xf32>
    %c3 = arith.constant 3 : index
    %132 = memref.load %arg1[%c3] : memref<12xf32, #tpu.memory_space<smem>>
    %c7 = arith.constant 7 : index
    %133 = memref.load %arg1[%c7] : memref<12xf32, #tpu.memory_space<smem>>
    %134 = vector.broadcast %130 : vector<1x32xf32> to vector<8x32xf32>
    %135 = arith.mulf %127, %134 : vector<8x32xf32>
    %136 = vector.broadcast %131 : vector<1x32xf32> to vector<8x32xf32>
    %137 = arith.mulf %129, %136 : vector<8x32xf32>
    %138 = arith.subf %135, %137 : vector<8x32xf32>
    %cst_20 = arith.constant dense<0.000000e+00> : vector<8xf32>
    %139 = vector.multi_reduction <add>, %138, %cst_20 [1] : vector<8x32xf32> to vector<8xf32>
    %140 = vector.shape_cast %139 : vector<8xf32> to vector<8x1xf32>
    %141 = vector.broadcast %131 : vector<1x32xf32> to vector<8x32xf32>
    %142 = arith.mulf %127, %141 : vector<8x32xf32>
    %143 = vector.broadcast %130 : vector<1x32xf32> to vector<8x32xf32>
    %144 = arith.mulf %129, %143 : vector<8x32xf32>
    %145 = arith.addf %142, %144 : vector<8x32xf32>
    %cst_21 = arith.constant dense<0.000000e+00> : vector<8xf32>
    %146 = vector.multi_reduction <add>, %145, %cst_21 [1] : vector<8x32xf32> to vector<8xf32>
    %147 = vector.shape_cast %146 : vector<8xf32> to vector<8x1xf32>
    %cst_22 = arith.constant dense<0.000000e+00> : vector<8xf32>
    %148 = vector.multi_reduction <add>, %127, %cst_22 [1] : vector<8x32xf32> to vector<8xf32>
    %149 = vector.shape_cast %148 : vector<8xf32> to vector<8x1xf32>
    %cst_23 = arith.constant dense<0.000000e+00> : vector<8xf32>
    %150 = vector.multi_reduction <add>, %129, %cst_23 [1] : vector<8x32xf32> to vector<8xf32>
    %151 = vector.shape_cast %150 : vector<8xf32> to vector<8x1xf32>
    %152 = vector.broadcast %149 : vector<8x1xf32> to vector<8x32xf32>
    %153 = vector.broadcast %130 : vector<1x32xf32> to vector<8x32xf32>
    %154 = arith.mulf %152, %153 : vector<8x32xf32>
    %155 = vector.broadcast %140 : vector<8x1xf32> to vector<8x32xf32>
    %156 = arith.addf %155, %154 : vector<8x32xf32>
    %157 = vector.broadcast %151 : vector<8x1xf32> to vector<8x32xf32>
    %158 = vector.broadcast %131 : vector<1x32xf32> to vector<8x32xf32>
    %159 = arith.mulf %157, %158 : vector<8x32xf32>
    %160 = arith.addf %156, %159 : vector<8x32xf32>
    %161 = vector.broadcast %132 : f32 to vector<8x32xf32>
    %162 = arith.addf %160, %161 : vector<8x32xf32>
    %163 = vector.broadcast %151 : vector<8x1xf32> to vector<8x32xf32>
    %164 = vector.broadcast %130 : vector<1x32xf32> to vector<8x32xf32>
    %165 = arith.mulf %163, %164 : vector<8x32xf32>
    %166 = vector.broadcast %147 : vector<8x1xf32> to vector<8x32xf32>
    %167 = arith.addf %166, %165 : vector<8x32xf32>
    %168 = vector.broadcast %149 : vector<8x1xf32> to vector<8x32xf32>
    %169 = vector.broadcast %131 : vector<1x32xf32> to vector<8x32xf32>
    %170 = arith.mulf %168, %169 : vector<8x32xf32>
    %171 = arith.subf %167, %170 : vector<8x32xf32>
    %172 = vector.broadcast %133 : f32 to vector<8x32xf32>
    %173 = arith.addf %171, %172 : vector<8x32xf32>
    %cst_24 = arith.constant 0.000000e+00 : f32
    %174 = vector.broadcast %cst_24 : f32 to vector<8x32xf32>
    %175 = arith.maximumf %162, %174 : vector<8x32xf32>
    %cst_25 = arith.constant 0.000000e+00 : f32
    %176 = vector.broadcast %cst_25 : f32 to vector<8x32xf32>
    %177 = arith.maximumf %173, %176 : vector<8x32xf32>
    %c0_26 = arith.constant 0 : index
    %c0_27 = arith.constant 0 : index
    %c0_28 = arith.constant 0 : index
    %178 = vector.load %arg4[%c0_26, %c0_27, %c0_28] : memref<2x32x16xf32, #tpu.memory_space<vmem>>, vector<1x32x16xf32>
    %179 = vector.shape_cast %178 : vector<1x32x16xf32> to vector<32x16xf32>
    %cst_29 = arith.constant dense<0.000000e+00> : vector<8x16xf32>
    %180 = tpu.matmul %175, %179, %cst_29 {dimension_numbers = #tpu.dot_dimension_numbers<[1], [0], [0], [1], [0, 0, 1, 1], [], []>} : vector<8x32xf32>, vector<32x16xf32>, vector<8x16xf32> -> vector<8x16xf32>
    %c1_30 = arith.constant 1 : index
    %c0_31 = arith.constant 0 : index
    %c0_32 = arith.constant 0 : index
    %181 = vector.load %arg4[%c1_30, %c0_31, %c0_32] : memref<2x32x16xf32, #tpu.memory_space<vmem>>, vector<1x32x16xf32>
    %182 = vector.shape_cast %181 : vector<1x32x16xf32> to vector<32x16xf32>
    %cst_33 = arith.constant dense<0.000000e+00> : vector<8x16xf32>
    %183 = tpu.matmul %177, %182, %cst_33 {dimension_numbers = #tpu.dot_dimension_numbers<[1], [0], [0], [1], [0, 0, 1, 1], [], []>} : vector<8x32xf32>, vector<32x16xf32>, vector<8x16xf32> -> vector<8x16xf32>
    %184 = arith.addf %180, %183 : vector<8x16xf32>
    %c0_34 = arith.constant 0 : index
    %c0_35 = arith.constant 0 : index
    %185 = vector.load %arg5[%c0_34, %c0_35] : memref<1x16xf32, #tpu.memory_space<vmem>>, vector<1x16xf32>
    %186 = vector.broadcast %185 : vector<1x16xf32> to vector<8x16xf32>
    %187 = arith.addf %184, %186 : vector<8x16xf32>
    %c0_36 = arith.constant 0 : index
    %c0_37 = arith.constant 0 : index
    %188 = vector.load %arg10[%c0_36, %c0_37] : memref<8x16xf32, #tpu.memory_space<vmem>>, vector<8x16xf32>
    tpu.vector_store %arg10[%c0_36, %c0_37], %187 {strides = array<i32>} : memref<8x16xf32, #tpu.memory_space<vmem>>, vector<8x16xf32>,
    %189 = vector.extract_strided_slice %1 {offsets = [8, 0], sizes = [1, 32], strides = [1, 1]} : vector<12x32xf32> to vector<1x32xf32>
    %190 = vector.extract_strided_slice %1 {offsets = [10, 0], sizes = [1, 32], strides = [1, 1]} : vector<12x32xf32> to vector<1x32xf32>
    %c8 = arith.constant 8 : index
    %191 = memref.load %arg1[%c8] : memref<12xf32, #tpu.memory_space<smem>>
    %c10 = arith.constant 10 : index
    %192 = memref.load %arg1[%c10] : memref<12xf32, #tpu.memory_space<smem>>
    %193 = vector.broadcast %189 : vector<1x32xf32> to vector<8x32xf32>
    %194 = arith.mulf %0, %193 : vector<8x32xf32>
    %cst_38 = arith.constant dense<0.000000e+00> : vector<8xf32>
    %195 = vector.multi_reduction <add>, %194, %cst_38 [1] : vector<8x32xf32> to vector<8xf32>
    %196 = vector.shape_cast %195 : vector<8xf32> to vector<8x1xf32>
    %197 = vector.broadcast %190 : vector<1x32xf32> to vector<8x32xf32>
    %198 = arith.mulf %0, %197 : vector<8x32xf32>
    %cst_39 = arith.constant dense<0.000000e+00> : vector<8xf32>
    %199 = vector.multi_reduction <add>, %198, %cst_39 [1] : vector<8x32xf32> to vector<8xf32>
    %200 = vector.shape_cast %199 : vector<8xf32> to vector<8x1xf32>
    %cst_40 = arith.constant dense<0.000000e+00> : vector<8xf32>
    %201 = vector.multi_reduction <add>, %0, %cst_40 [1] : vector<8x32xf32> to vector<8xf32>
    %202 = vector.shape_cast %201 : vector<8xf32> to vector<8x1xf32>
    %203 = vector.broadcast %202 : vector<8x1xf32> to vector<8x32xf32>
    %204 = vector.broadcast %189 : vector<1x32xf32> to vector<8x32xf32>
    %205 = arith.mulf %203, %204 : vector<8x32xf32>
    %206 = vector.broadcast %196 : vector<8x1xf32> to vector<8x32xf32>
    %207 = arith.addf %206, %205 : vector<8x32xf32>
    %208 = vector.broadcast %191 : f32 to vector<8x32xf32>
    %209 = arith.addf %207, %208 : vector<8x32xf32>
    %210 = vector.broadcast %202 : vector<8x1xf32> to vector<8x32xf32>
    %211 = vector.broadcast %190 : vector<1x32xf32> to vector<8x32xf32>
    %212 = arith.mulf %210, %211 : vector<8x32xf32>
    %213 = vector.broadcast %200 : vector<8x1xf32> to vector<8x32xf32>
    %214 = arith.subf %213, %212 : vector<8x32xf32>
    %215 = vector.broadcast %192 : f32 to vector<8x32xf32>
    %216 = arith.addf %214, %215 : vector<8x32xf32>
    %cst_41 = arith.constant 0.000000e+00 : f32
    %217 = vector.broadcast %cst_41 : f32 to vector<8x32xf32>
    %218 = arith.maximumf %209, %217 : vector<8x32xf32>
    %cst_42 = arith.constant 0.000000e+00 : f32
    %219 = vector.broadcast %cst_42 : f32 to vector<8x32xf32>
    %220 = arith.maximumf %216, %219 : vector<8x32xf32>
    %221 = vector.extract_strided_slice %1 {offsets = [9, 0], sizes = [1, 32], strides = [1, 1]} : vector<12x32xf32> to vector<1x32xf32>
    %222 = vector.extract_strided_slice %1 {offsets = [11, 0], sizes = [1, 32], strides = [1, 1]} : vector<12x32xf32> to vector<1x32xf32>
    %c9 = arith.constant 9 : index
    %223 = memref.load %arg1[%c9] : memref<12xf32, #tpu.memory_space<smem>>
    %c11 = arith.constant 11 : index
    %224 = memref.load %arg1[%c11] : memref<12xf32, #tpu.memory_space<smem>>
    %225 = vector.broadcast %221 : vector<1x32xf32> to vector<8x32xf32>
    %226 = arith.mulf %218, %225 : vector<8x32xf32>
    %227 = vector.broadcast %222 : vector<1x32xf32> to vector<8x32xf32>
    %228 = arith.mulf %220, %227 : vector<8x32xf32>
    %229 = arith.subf %226, %228 : vector<8x32xf32>
    %cst_43 = arith.constant dense<0.000000e+00> : vector<8xf32>
    %230 = vector.multi_reduction <add>, %229, %cst_43 [1] : vector<8x32xf32> to vector<8xf32>
    %231 = vector.shape_cast %230 : vector<8xf32> to vector<8x1xf32>
    %232 = vector.broadcast %222 : vector<1x32xf32> to vector<8x32xf32>
    %233 = arith.mulf %218, %232 : vector<8x32xf32>
    %234 = vector.broadcast %221 : vector<1x32xf32> to vector<8x32xf32>
    %235 = arith.mulf %220, %234 : vector<8x32xf32>
    %236 = arith.addf %233, %235 : vector<8x32xf32>
    %cst_44 = arith.constant dense<0.000000e+00> : vector<8xf32>
    %237 = vector.multi_reduction <add>, %236, %cst_44 [1] : vector<8x32xf32> to vector<8xf32>
    %238 = vector.shape_cast %237 : vector<8xf32> to vector<8x1xf32>
    %cst_45 = arith.constant dense<0.000000e+00> : vector<8xf32>
    %239 = vector.multi_reduction <add>, %218, %cst_45 [1] : vector<8x32xf32> to vector<8xf32>
    %240 = vector.shape_cast %239 : vector<8xf32> to vector<8x1xf32>
    %cst_46 = arith.constant dense<0.000000e+00> : vector<8xf32>
    %241 = vector.multi_reduction <add>, %220, %cst_46 [1] : vector<8x32xf32> to vector<8xf32>
    %242 = vector.shape_cast %241 : vector<8xf32> to vector<8x1xf32>
    %243 = vector.broadcast %240 : vector<8x1xf32> to vector<8x32xf32>
    %244 = vector.broadcast %221 : vector<1x32xf32> to vector<8x32xf32>
    %245 = arith.mulf %243, %244 : vector<8x32xf32>
    %246 = vector.broadcast %231 : vector<8x1xf32> to vector<8x32xf32>
    %247 = arith.addf %246, %245 : vector<8x32xf32>
    %248 = vector.broadcast %242 : vector<8x1xf32> to vector<8x32xf32>
    %249 = vector.broadcast %222 : vector<1x32xf32> to vector<8x32xf32>
    %250 = arith.mulf %248, %249 : vector<8x32xf32>
    %251 = arith.addf %247, %250 : vector<8x32xf32>
    %252 = vector.broadcast %223 : f32 to vector<8x32xf32>
    %253 = arith.addf %251, %252 : vector<8x32xf32>
    %254 = vector.broadcast %242 : vector<8x1xf32> to vector<8x32xf32>
    %255 = vector.broadcast %221 : vector<1x32xf32> to vector<8x32xf32>
    %256 = arith.mulf %254, %255 : vector<8x32xf32>
    %257 = vector.broadcast %238 : vector<8x1xf32> to vector<8x32xf32>
    %258 = arith.addf %257, %256 : vector<8x32xf32>
    %259 = vector.broadcast %240 : vector<8x1xf32> to vector<8x32xf32>
    %260 = vector.broadcast %222 : vector<1x32xf32> to vector<8x32xf32>
    %261 = arith.mulf %259, %260 : vector<8x32xf32>
    %262 = arith.subf %258, %261 : vector<8x32xf32>
    %263 = vector.broadcast %224 : f32 to vector<8x32xf32>
    %264 = arith.addf %262, %263 : vector<8x32xf32>
    %cst_47 = arith.constant 0.000000e+00 : f32
    %265 = vector.broadcast %cst_47 : f32 to vector<8x32xf32>
    %266 = arith.maximumf %253, %265 : vector<8x32xf32>
    %cst_48 = arith.constant 0.000000e+00 : f32
    %267 = vector.broadcast %cst_48 : f32 to vector<8x32xf32>
    %268 = arith.maximumf %264, %267 : vector<8x32xf32>
    %c0_49 = arith.constant 0 : index
    %c0_50 = arith.constant 0 : index
    %269 = vector.load %arg6[%c0_49, %c0_50] : memref<64x32xf32, #tpu.memory_space<vmem>>, vector<64x32xf32>
    %270 = vector.extract_strided_slice %269 {offsets = [0, 0], sizes = [32, 32], strides = [1, 1]} : vector<64x32xf32> to vector<32x32xf32>
    %cst_51 = arith.constant dense<0.000000e+00> : vector<8x32xf32>
    %271 = tpu.matmul %266, %270, %cst_51 {dimension_numbers = #tpu.dot_dimension_numbers<[1], [0], [0], [1], [0, 0, 1, 1], [], []>} : vector<8x32xf32>, vector<32x32xf32>, vector<8x32xf32> -> vector<8x32xf32>
    %272 = vector.extract_strided_slice %269 {offsets = [32, 0], sizes = [32, 32], strides = [1, 1]} : vector<64x32xf32> to vector<32x32xf32>
    %cst_52 = arith.constant dense<0.000000e+00> : vector<8x32xf32>
    %273 = tpu.matmul %268, %272, %cst_52 {dimension_numbers = #tpu.dot_dimension_numbers<[1], [0], [0], [1], [0, 0, 1, 1], [], []>} : vector<8x32xf32>, vector<32x32xf32>, vector<8x32xf32> -> vector<8x32xf32>
    %274 = arith.addf %271, %273 : vector<8x32xf32>
    %c0_53 = arith.constant 0 : index
    %c0_54 = arith.constant 0 : index
    %275 = vector.load %arg7[%c0_53, %c0_54] : memref<1x32xf32, #tpu.memory_space<vmem>>, vector<1x32xf32>
    %276 = vector.broadcast %275 : vector<1x32xf32> to vector<8x32xf32>
    %277 = arith.addf %274, %276 : vector<8x32xf32>
    %cst_55 = arith.constant 0.000000e+00 : f32
    %278 = vector.broadcast %cst_55 : f32 to vector<8x32xf32>
    %279 = arith.maximumf %277, %278 : vector<8x32xf32>
    %c0_56 = arith.constant 0 : index
    %c0_57 = arith.constant 0 : index
    %280 = vector.load %arg8[%c0_56, %c0_57] : memref<32x3xf32, #tpu.memory_space<vmem>>, vector<32x3xf32>
    %cst_58 = arith.constant dense<0.000000e+00> : vector<8x3xf32>
    %281 = tpu.matmul %279, %280, %cst_58 {dimension_numbers = #tpu.dot_dimension_numbers<[1], [0], [0], [1], [0, 0, 1, 1], [], []>} : vector<8x32xf32>, vector<32x3xf32>, vector<8x3xf32> -> vector<8x3xf32>
    %c0_59 = arith.constant 0 : index
    %c0_60 = arith.constant 0 : index
    %282 = vector.load %arg9[%c0_59, %c0_60] : memref<1x3xf32, #tpu.memory_space<vmem>>, vector<1x3xf32>
    %283 = vector.broadcast %282 : vector<1x3xf32> to vector<8x3xf32>
    %284 = arith.addf %281, %283 : vector<8x3xf32>
    %c0_61 = arith.constant 0 : index
    %c0_62 = arith.constant 0 : index
    %285 = vector.load %arg11[%c0_61, %c0_62] : memref<8x3xf32, #tpu.memory_space<vmem>>, vector<8x3xf32>
    tpu.vector_store %arg11[%c0_61, %c0_62], %284 {strides = array<i32>} : memref<8x3xf32, #tpu.memory_space<vmem>>, vector<8x3xf32>,
    return
  }
  func.func @transform_0(%arg0: i32) -> i32 {
    %c0_i32 = arith.constant 0 : i32
    %c0_i32_0 = arith.constant 0 : i32
    return %c0_i32 : i32
  }
  func.func @transform_1(%arg0: i32) -> (i32, i32) {
    %c0_i32 = arith.constant 0 : i32
    %c0_i32_0 = arith.constant 0 : i32
    return %arg0, %c0_i32 : i32, i32
  }
  func.func @transform_2(%arg0: i32) -> (i32, i32) {
    %c0_i32 = arith.constant 0 : i32
    %c0_i32_0 = arith.constant 0 : i32
    %c0_i32_1 = arith.constant 0 : i32
    return %c0_i32, %c0_i32_0 : i32, i32
  }
  func.func @transform_3(%arg0: i32) -> (i32, i32, i32) {
    %c0_i32 = arith.constant 0 : i32
    %c0_i32_0 = arith.constant 0 : i32
    %c0_i32_1 = arith.constant 0 : i32
    %c0_i32_2 = arith.constant 0 : i32
    return %c0_i32, %c0_i32_0, %c0_i32_1 : i32, i32, i32
  }
  func.func @transform_4(%arg0: i32) -> (i32, i32) {
    %c0_i32 = arith.constant 0 : i32
    %c0_i32_0 = arith.constant 0 : i32
    %c0_i32_1 = arith.constant 0 : i32
    return %c0_i32, %c0_i32_0 : i32, i32
  }
  func.func @transform_5(%arg0: i32) -> (i32, i32) {
    %c0_i32 = arith.constant 0 : i32
    %c0_i32_0 = arith.constant 0 : i32
    %c0_i32_1 = arith.constant 0 : i32
    return %c0_i32, %c0_i32_0 : i32, i32
  }
  func.func @transform_6(%arg0: i32) -> (i32, i32) {
    %c0_i32 = arith.constant 0 : i32
    %c0_i32_0 = arith.constant 0 : i32
    %c0_i32_1 = arith.constant 0 : i32
    return %c0_i32, %c0_i32_0 : i32, i32
  }
  func.func @transform_7(%arg0: i32) -> (i32, i32) {
    %c0_i32 = arith.constant 0 : i32
    %c0_i32_0 = arith.constant 0 : i32
    %c0_i32_1 = arith.constant 0 : i32
    return %c0_i32, %c0_i32_0 : i32, i32
  }
  func.func @transform_8(%arg0: i32) -> (i32, i32) {
    %c0_i32 = arith.constant 0 : i32
    %c0_i32_0 = arith.constant 0 : i32
    %c0_i32_1 = arith.constant 0 : i32
    return %c0_i32, %c0_i32_0 : i32, i32
  }
  func.func @transform_9(%arg0: i32) -> (i32, i32) {
    %c0_i32 = arith.constant 0 : i32
    %c0_i32_0 = arith.constant 0 : i32
    return %arg0, %c0_i32 : i32, i32
  }
  func.func @transform_10(%arg0: i32) -> (i32, i32) {
    %c0_i32 = arith.constant 0 : i32
    %c0_i32_0 = arith.constant 0 : i32
    return %arg0, %c0_i32 : i32, i32
  }
}

</mosaic_0001>

<bundles_post_ra>
// kernel: tpu_custom_call.1
= control target key start
LH: loop header
LB: loop body
LE: loop exit
PB: predicated region body
PF: predicated region fallthrough
CT: control target
= control target key end

     0   :  { %16 = vsyncpa [#allocation4], 0  ;;  %s682_s0 = inlined_call_operand.vmem [shape: f32[12], index: 0, kind: input, shape index: {}]   ;;  %s683_s1 = inlined_call_operand.vmem [shape: f32[8,32], index: 1, kind: input, shape index: {}]   ;;  %s684_s2 = inlined_call_operand.vmem [shape: f32[12,32], index: 2, kind: input, shape index: {}]   ;;  %s685_s3 = inlined_call_operand.vmem [shape: f32[2,32,16], index: 3, kind: input, shape index: {}]   ;;  %s686_s4 = inlined_call_operand.vmem [shape: f32[1,16], index: 4, kind: input, shape index: {}]   ;;  %s687_s5 = inlined_call_operand.vmem [shape: f32[64,32], index: 5, kind: input, shape index: {}]   ;;  %s688_s6 = inlined_call_operand.vmem [shape: f32[1,32], index: 6, kind: input, shape index: {}]   ;;  %s689_s7 = inlined_call_operand.vmem [shape: f32[32,3], index: 7, kind: input, shape index: {}]   ;;  %s690_s8 = inlined_call_operand.vmem [shape: f32[1,3], index: 8, kind: input, shape index: {}]   ;;  %s691_s9 = inlined_call_operand.hbm [shape: f32[8,16], index: 9, kind: output, shape index: {0}]   ;;  %s692_s10 = inlined_call_operand.vmem [shape: f32[8,3], index: 10, kind: output, shape index: {1}]  }
   0x1   :  { %17 = vsyncpa [#allocation3], 0  ;;  %s23_s15 = sshll.u32 %s682_s0, 4  ;;  %s484_s16 = smov [#allocation2]   ;;  %s24_s15 = int_to_ptr.vmem [resolvable:$true] %s23_s15 }
   0x2   :  { %26 = dma.vmem_to_smem %s24_s15, 16, %s484_s16, [#allocation4]  }
   0x3   :  { %480 = dma.done.wait [#allocation4], 16  }
   0x4   :  { %481 = vsyncadd [#allocation4], 4294967280 }
   0x5   :  { %47 = sfence }
   0x6   :  { %v48_v0 = vld [vmem:[%s683_s1] sm:$0xff]  ;;  %vm55_vm0 = vcmask 261120   ;;  %v50_v1 = vld [vmem:[%s684_s2 + $0x8] sm:$0xf]  ;;  %s433_s0 = sld [smem:[#allocation2 + $0xa]]  ;;  %s485_s26 = smov [#allocation5]  }
   0x7   :  { %v553_v2 = vld [vmem:[%s684_s2] sm:$0xff]  ;;  %v64_v3 = vsel %vm55_vm0, %v48_v0, 0.0  ;;  %v254_v4 = vperm.slane %v50_v1, 2  ;;  %v249_v6 = vperm.slane %v50_v1, 0  ;;  %s432_s1 = sld [smem:[#allocation2 + $0x8]]  ;;  %v562_v30 = vperm.slane %v50_v1, 3 }
   0x8   :  { %65 = vadd.xlane.f32.xlu0 %v64_v3  ;;  %v59_v5 = vperm.slane %v553_v2, 4  ;;  %v53_v8 = vperm.slane %v553_v2, 0  ;;  %s419_s2 = sld [smem:[#allocation2 + $0x4]]  ;;  %v271_v37 = vperm.slane %v50_v1, 1  ;;  %v569_v46 = vperm.slane %v553_v2, 1  ;;  %v308_v1 = vld [vmem:[%s687_s5 + $0x18] sm:$0xff] }
   0x9   :  { %v255_v7 = vmul.f32 %v254_v4, %v48_v0  ;;  %v250_v10 = vmul.f32 %v249_v6, %v48_v0  ;;  %s51_s23 = sld [smem:[#allocation2]]  ;;  %v572_v47 = vperm.slane %v553_v2, 5  ;;  %351 = vmatpush.msra.mxu3 %v308_v1  ;;  %v307_v3 = vld [vmem:[%s687_s5 + $0x10] sm:$0xff]  ;;  %s405_s29 = sshll.u32 %s691_s9, 4  ;;  %vm245_vm1 = vcmask 130048   ;;  %s406_s29 = int_to_ptr.hbm [resolvable:$true] %s405_s29 }
   0xa   :  { %v60_v9 = vmul.f32 %v59_v5, %v48_v0  ;;  %v54_v14 = vmul.f32 %v53_v8, %v48_v0  ;;  %s434_s20 = sld [smem:[#allocation2 + $0x9]]  ;;  %vm396_vm2 = vcmask 23552  }
   0xb   :  { %v256_v11 = vsel %vm55_vm0, %v255_v7, 0.0  ;;  %v251_v13 = vsel %vm55_vm0, %v250_v10, 0.0  ;;  %352 = vmatpush.msra.mxu3 %v307_v3  ;;  %v305_v7 = vld [vmem:[%s687_s5] sm:$0xff]  ;;  %s435_s21 = sld [smem:[#allocation2 + $0xb]] }
   0xc   :  { %257 = vadd.xlane.f32.xlu1 %v256_v11  ;;  %v61_v12 = vsel %vm55_vm0, %v60_v9, 0.0  ;;  %v56_v15 = vsel %vm55_vm0, %v54_v14, 0.0  ;;  %v265_v18 = vstv %s433_s0  ;;  %v309_v9 = vld [vmem:[%s687_s5 + $0x20] sm:$0xff]  ;;  %s421_s22 = sld [smem:[#allocation2 + $0x5]] }
   0xd   :  { %62 = vadd.xlane.f32.xlu2 %v61_v12  ;;  %v261_v25 = vstv %s432_s1  ;;  %s422_s0 = sld [smem:[#allocation2 + $0x2]] }
   0xe   :  { %v73_v31 = vstv %s419_s2  ;;  %s423_s1 = sld [smem:[#allocation2 + $0x6]] }
   0xf   :  { %v69_v35 = vstv %s51_s23  ;;  %s425_s2 = sld [smem:[#allocation2 + $0x7]] }
  0x10   :  { %252 = vadd.xlane.f32.xlu0 %v251_v13  ;;  %s424_s23 = sld [smem:[#allocation2 + $0x3]] }
  0x14   :  { %57 = vadd.xlane.f32.xlu1 %v56_v15 }
  0x7b   :  { %v66_v16 = vpop.xlane.xlu0 %65 }
  0x7c   :  { %v263_v17 = vmul.f32 %v254_v4, %v66_v16  ;;  %v71_v23 = vmul.f32 %v66_v16, %v59_v5  ;;  %v259_v24 = vmul.f32 %v249_v6, %v66_v16  ;;  %v67_v34 = vmul.f32 %v66_v16, %v53_v8  ;;  %v312_v4 = vld [vmem:[%s687_s5 + $0x38] sm:$0xff]  ;;  %v306_v5 = vld [vmem:[%s687_s5 + $0x8] sm:$0xff]  ;;  %v311_v6 = vld [vmem:[%s687_s5 + $0x30] sm:$0xff] }
  0x7d   :  { %328 = vmatpush.msra.mxu2 %v312_v4  ;;  %353 = vmatpush.msra.mxu3 %v306_v5  ;;  %v310_v8 = vld [vmem:[%s687_s5 + $0x28] sm:$0xff]  ;;  %s420_s5 = sld [smem:[#allocation2 + $0x1]] }
  0x7f   :  { %v258_v19 = vpop.xlane.xlu1 %257  ;;  %329 = vmatpush.msra.mxu2 %v311_v6  ;;  %354 = vmatpush.msra.mxu3 %v305_v7 }
  0x80   :  { %v264_v20 = vsub.f32 %v258_v19, %v263_v17  ;;  %v63_v21 = vpop.xlane.xlu2 %62  ;;  %v295_v17 = vstv %s434_s20 }
  0x81   :  { %v72_v28 = vsub.f32 %v63_v21, %v71_v23  ;;  %330 = vmatpush.msra.mxu2 %v310_v8  ;;  %v145_v8 = vstv %s423_s1 }
  0x82   :  { %v266_v22 = vadd.f32 %v265_v18, %v264_v20 }
  0x83   :  { %v253_v26 = vpop.xlane.xlu0 %252  ;;  %v74_v38 = vadd.f32 %v73_v31, %v72_v28  ;;  %331 = vmatpush.msra.mxu2 %v309_v9 }
  0x84   :  { %v268_v27 = vmax.f32 %v266_v22, 0.0  ;;  %v260_v29 = vadd.f32 %v259_v24, %v253_v26  ;;  %v301_v24 = vstv %s435_s21 }
  0x85   :  { %v76_v48 = vmax.f32 %v74_v38, 0.0 }
  0x86   :  { %v262_v32 = vadd.f32 %v261_v25, %v260_v29  ;;  %v288_v33 = vsel %vm55_vm0, %v268_v27, 0.0  ;;  %v274_v41 = vmul.f32 %v562_v30, %v268_v27  ;;  %v280_v51 = vmul.f32 %v271_v37, %v268_v27 }
  0x87   :  { %289 = vadd.xlane.f32.xlu0 %v288_v33  ;;  %v58_v36 = vpop.xlane.xlu1 %57  ;;  %v88_v56 = vmul.f32 %v569_v46, %v76_v48  ;;  %v82_v60 = vmul.f32 %v572_v47, %v76_v48  ;;  %v96_v61 = vsel %vm55_vm0, %v76_v48, 0.0 }
  0x88   :  { %v267_v39 = vmax.f32 %v262_v32, 0.0  ;;  %v68_v40 = vadd.f32 %v67_v34, %v58_v36  ;;  %v109_v36 = vstv %s421_s22 }
  0x8a   :  { %v70_v42 = vadd.f32 %v69_v35, %v68_v40  ;;  %v285_v43 = vsel %vm55_vm0, %v267_v39, 0.0  ;;  %v272_v44 = vmul.f32 %v271_v37, %v267_v39  ;;  %v279_v45 = vmul.f32 %v562_v30, %v267_v39 }
  0x8b   :  { %286 = vadd.xlane.f32.xlu2 %v285_v43  ;;  %v103_v40 = vstv %s420_s5 }
  0x8c   :  { %v75_v49 = vmax.f32 %v70_v42, 0.0  ;;  %v275_v50 = vsub.f32 %v272_v44, %v274_v41  ;;  %v281_v54 = vadd.f32 %v280_v51, %v279_v45  ;;  %v117_v45 = vperm.slane %v553_v2, 6 }
  0x8e   :  { %v276_v52 = vsel %vm55_vm0, %v275_v50, 0.0  ;;  %v93_v53 = vsel %vm55_vm0, %v75_v49, 0.0  ;;  %v87_v55 = vmul.f32 %v572_v47, %v75_v49  ;;  %v282_v57 = vsel %vm55_vm0, %v281_v54, 0.0 }
  0x8f   :  { %277 = vadd.xlane.f32.xlu1 %v276_v52  ;;  %94 = vadd.xlane.f32.xlu0 %v93_v53  ;;  %v80_v59 = vmul.f32 %v569_v46, %v75_v49  ;;  %v115_v49 = vperm.slane %v553_v2, 2 }
  0x90   :  { %v89_v58 = vadd.f32 %v88_v56, %v87_v55 }
  0x91   :  { %v83_v63 = vsub.f32 %v80_v59, %v82_v60 }
  0x92   :  { %v90_v62 = vsel %vm55_vm0, %v89_v58, 0.0 }
  0x93   :  { %283 = vadd.xlane.f32.xlu2 %v282_v57  ;;  %v84_v0 = vsel %vm55_vm0, %v83_v63, 0.0 }
  0x97   :  { %97 = vadd.xlane.f32.xlu1 %v96_v61  ;;  %91 = vadd.xlane.f32.xlu0 %v90_v62 }
  0x9b   :  { %85 = vadd.xlane.f32.xlu2 %v84_v0  ;;  %v139_v0 = vstv %s422_s0 }
  0xfa   :  { %v290_v10 = vpop.xlane.xlu0 %289 }
  0xfb   :  { %v293_v15 = vmul.f32 %v290_v10, %v562_v30  ;;  %v297_v18 = vmul.f32 %v290_v10, %v271_v37 }
  0xfe   :  { %v287_v11 = vpop.xlane.xlu2 %286 }
  0xff   :  { %v291_v12 = vmul.f32 %v287_v11, %v271_v37  ;;  %v299_v21 = vmul.f32 %v287_v11, %v562_v30 }
 0x102   :  { %v95_v13 = vpop.xlane.xlu0 %94  ;;  %v278_v14 = vpop.xlane.xlu1 %277 }
 0x103   :  { %v292_v16 = vadd.f32 %v291_v12, %v278_v14  ;;  %v99_v32 = vmul.f32 %v95_v13, %v569_v46  ;;  %v107_v33 = vmul.f32 %v95_v13, %v572_v47  ;;  %v153_v13 = vperm.slane %v553_v2, 7 }
 0x105   :  { %v294_v19 = vadd.f32 %v293_v15, %v292_v16  ;;  %v151_v15 = vperm.slane %v553_v2, 3  ;;  %v428_v2 = vld [vmem:[%s685_s3 + $0x30] sm:$0xff] }
 0x106   :  { %v284_v20 = vpop.xlane.xlu2 %283 }
 0x107   :  { %v298_v22 = vadd.f32 %v297_v18, %v284_v20  ;;  %v296_v23 = vadd.f32 %v295_v17, %v294_v19 }
 0x109   :  { %v300_v25 = vsub.f32 %v298_v22, %v299_v21  ;;  %v303_v26 = vmax.f32 %v296_v23, 0.0 }
 0x10a   :  { %v98_v27 = vpop.xlane.xlu1 %97  ;;  %v92_v31 = vpop.xlane.xlu0 %91 }
 0x10b   :  { %v105_v28 = vmul.f32 %v98_v27, %v569_v46  ;;  %437 = vmatmul.msk.f32.vlgmr.msra.gmra.mxu3 %vm55_vm0, %v303_v26  ;;  %v302_v29 = vadd.f32 %v301_v24, %v300_v25  ;;  %v101_v37 = vmul.f32 %v98_v27, %v572_v47  ;;  %v429_v25 = vld [vmem:[%s685_s3 + $0x38] sm:$0xff]  ;;  %v427_v26 = vld [vmem:[%s685_s3 + $0x28] sm:$0xff] }
 0x10c   :  { %209 = vmatpush.msra.mxu0 %v429_v25  ;;  %v188_v27 = vld [vmem:[%s685_s3 + $0x18] sm:$0xff] }
 0x10d   :  { %v106_v34 = vadd.f32 %v105_v28, %v92_v31  ;;  %v304_v35 = vmax.f32 %v302_v29, 0.0  ;;  %232 = vmatpush.msra.mxu1 %v188_v27  ;;  %v426_v28 = vld [vmem:[%s685_s3 + $0x20] sm:$0xff]  ;;  %v187_v29 = vld [vmem:[%s685_s3 + $0x10] sm:$0xff]  ;;  %v368_v31 = vld [vmem:[%s689_s7 + $0x18] sm:$0xff] }
 0x10e   :  { %v86_v30 = vpop.xlane.xlu2 %85  ;;  %210 = vmatpush.msra.mxu0 %v428_v2 }
 0x10f   :  { %v108_v38 = vsub.f32 %v106_v34, %v107_v33  ;;  %v100_v39 = vadd.f32 %v99_v32, %v86_v30  ;;  %436 = vmatmul.msk.f32.vlgmr.msra.gmra.mxu2 %vm55_vm0, %v304_v35  ;;  %233 = vmatpush.msra.mxu1 %v187_v29  ;;  %v186_v32 = vld [vmem:[%s685_s3 + $0x8] sm:$0xff]  ;;  %v367_v33 = vld [vmem:[%s689_s7 + $0x10] sm:$0xff]  ;;  %v185_v34 = vld [vmem:[%s685_s3] sm:$0xff] }
 0x110   :  { %211 = vmatpush.msra.mxu0 %v427_v26  ;;  %v366_v35 = vld [vmem:[%s689_s7 + $0x8] sm:$0xff]  ;;  %v365_v30 = vld [vmem:[%s689_s7] sm:$0xff] }
 0x111   :  { %v102_v41 = vadd.f32 %v101_v37, %v100_v39  ;;  %v110_v42 = vadd.f32 %v109_v36, %v108_v38  ;;  %234 = vmatpush.msra.mxu1 %v186_v32 }
 0x112   :  { %212 = vmatpush.msra.mxu0 %v426_v28 }
 0x113   :  { %v104_v43 = vadd.f32 %v103_v40, %v102_v41  ;;  %v112_v44 = vmax.f32 %v110_v42, 0.0  ;;  %235 = vmatpush.msra.mxu1 %v185_v34  ;;  %v181_v42 = vstv %s425_s2 }
 0x114   :  { %388 = vmatpush.msrb.mxu0 %v368_v31 }
 0x115   :  { %v132_v46 = vsel %vm55_vm0, %v112_v44, 0.0  ;;  %v111_v48 = vmax.f32 %v104_v43, 0.0  ;;  %v118_v51 = vmul.f32 %v117_v45, %v112_v44  ;;  %v124_v54 = vmul.f32 %v115_v49, %v112_v44 }
 0x116   :  { %133 = vadd.xlane.f32.xlu2 %v132_v46  ;;  %389 = vmatpush.msrb.mxu0 %v367_v33 }
 0x117   :  { %v129_v50 = vsel %vm55_vm0, %v111_v48, 0.0  ;;  %v116_v47 = vmul.f32 %v115_v49, %v111_v48  ;;  %v123_v52 = vmul.f32 %v117_v45, %v111_v48 }
 0x118   :  { %130 = vadd.xlane.f32.xlu1 %v129_v50  ;;  %390 = vmatpush.msrb.mxu0 %v366_v35 }
 0x119   :  { %v119_v53 = vsub.f32 %v116_v47, %v118_v51  ;;  %v125_v56 = vadd.f32 %v124_v54, %v123_v52  ;;  %v175_v51 = vstv %s424_s23 }
 0x11a   :  { %391 = vmatpush.msrb.mxu0 %v365_v30 }
 0x11b   :  { %v120_v55 = vsel %vm55_vm0, %v119_v53, 0.0  ;;  %v126_v57 = vsel %vm55_vm0, %v125_v56, 0.0  ;;  %v441_v53 = vld [vmem:[%s688_s6] ss:$0 sm:$0xff]  ;;  %s403_s6 = sshll.u32 %s485_s26, 4  ;;  %s404_s6 = int_to_ptr.vmem [resolvable:$true] %s403_s6 }
 0x11c   :  { %121 = vadd.xlane.f32.xlu0 %v120_v55 }
 0x120   :  { %127 = vadd.xlane.f32.xlu1 %v126_v57 }
 0x189   :  { %v134_v59 = vpop.xlane.xlu2 %133 }
 0x18a   :  { %v137_v62 = vmul.f32 %v134_v59, %v117_v45  ;;  %v141_v1 = vmul.f32 %v134_v59, %v115_v49 }
 0x18b   :  { %v131_v58 = vpop.xlane.xlu1 %130 }
 0x18c   :  { %v135_v60 = vmul.f32 %v131_v58, %v115_v49  ;;  %v143_v5 = vmul.f32 %v131_v58, %v117_v45 }
 0x18e   :  { %v356_v47 = vpop.f32.mrf.mxu3 }
 0x18f   :  { %v122_v61 = vpop.xlane.xlu0 %121 }
 0x190   :  { %v136_v63 = vadd.f32 %v135_v60, %v122_v61  ;;  %v442_v61 = vld [vmem:[%s686_s4] ss:$0 sm:$0xff] }
 0x192   :  { %v138_v3 = vadd.f32 %v137_v62, %v136_v63  ;;  %v333_v45 = vpop.f32.mrf.mxu2 }
 0x193   :  { %v128_v4 = vpop.xlane.xlu1 %127  ;;  %v357_v52 = vadd.f32 %v356_v47, %v333_v45 }
 0x194   :  { %v140_v6 = vadd.f32 %v139_v0, %v138_v3  ;;  %v142_v7 = vadd.f32 %v141_v1, %v128_v4  ;;  %v443_v0 = vld [vmem:[%s690_s8] ss:$0 sm:$0xff] }
 0x195   :  { %v363_v57 = vadd.f32 %v441_v53, %v357_v52 }
 0x196   :  { %v144_v9 = vsub.f32 %v142_v7, %v143_v5  ;;  %v147_v10 = vmax.f32 %v140_v6, 0.0 }
 0x197   :  { %v364_v59 = vmax.f32 %v363_v57, 0.0 }
 0x198   :  { %v146_v11 = vadd.f32 %v145_v8, %v144_v9  ;;  %v165_v12 = vsel %vm55_vm0, %v147_v10, 0.0  ;;  %v159_v17 = vmul.f32 %v153_v13, %v147_v10  ;;  %v152_v21 = vmul.f32 %v151_v15, %v147_v10 }
 0x199   :  { %166 = vadd.xlane.f32.xlu1 %v165_v12 }
 0x19a   :  { %v148_v14 = vmax.f32 %v146_v11, 0.0 }
 0x19c   :  { %v168_v16 = vsel %vm55_vm0, %v148_v14, 0.0  ;;  %v160_v18 = vmul.f32 %v151_v15, %v148_v14  ;;  %v154_v19 = vmul.f32 %v153_v13, %v148_v14 }
 0x19d   :  { %169 = vadd.xlane.f32.xlu2 %v168_v16 }
 0x19e   :  { %v161_v20 = vadd.f32 %v160_v18, %v159_v17  ;;  %v155_v23 = vsub.f32 %v152_v21, %v154_v19 }
 0x1a0   :  { %v162_v22 = vsel %vm55_vm0, %v161_v20, 0.0  ;;  %v156_v24 = vsel %vm55_vm0, %v155_v23, 0.0 }
 0x1a1   :  { %163 = vadd.xlane.f32.xlu0 %v162_v22 }
 0x1a5   :  { %157 = vadd.xlane.f32.xlu2 %v156_v24 }
 0x20c   :  { %v167_v37 = vpop.xlane.xlu1 %166 }
 0x20d   :  { %v179_v40 = vmul.f32 %v167_v37, %v153_v13  ;;  %v171_v43 = vmul.f32 %v167_v37, %v151_v15 }
 0x210   :  { %v170_v36 = vpop.xlane.xlu2 %169 }
 0x211   :  { %v177_v38 = vmul.f32 %v170_v36, %v151_v15  ;;  %v173_v48 = vmul.f32 %v170_v36, %v153_v13 }
 0x214   :  { %v164_v39 = vpop.xlane.xlu0 %163 }
 0x215   :  { %v178_v41 = vadd.f32 %v177_v38, %v164_v39 }
 0x217   :  { %v180_v44 = vsub.f32 %v178_v41, %v179_v40 }
 0x218   :  { %v158_v46 = vpop.xlane.xlu2 %157 }
 0x219   :  { %v172_v49 = vadd.f32 %v171_v43, %v158_v46  ;;  %v182_v50 = vadd.f32 %v181_v42, %v180_v44 }
 0x21b   :  { %v174_v54 = vadd.f32 %v173_v48, %v172_v49  ;;  %v184_v55 = vmax.f32 %v182_v50, 0.0 }
 0x21d   :  { %430 = vmatmul.msk.f32.vlgmr.msra.gmra.mxu0 %vm55_vm0, %v184_v55  ;;  %v176_v56 = vadd.f32 %v175_v51, %v174_v54 }
 0x21f   :  { %v183_v58 = vmax.f32 %v176_v56, 0.0 }
 0x221   :  { %431 = vmatmul.msk.f32.vlgmr.msra.gmra.mxu1 %vm55_vm0, %v183_v58 }
 0x225   :  { %438 = vmatmul.msk.f32.vlgmr.msrb.gmra.mxu0 %vm55_vm0, %v364_v59 }
 0x29a   :  { %v214_v60 = vpop.f32.mrf.mxu0 }
 0x29e   :  { %v237_v62 = vpop.f32.mrf.mxu1 }
 0x29f   :  { %v238_v63 = vadd.f32 %v237_v62, %v214_v60 }
 0x2a1   :  { %v244_v1 = vadd.f32 %v442_v61, %v238_v63 }
 0x2a2   :  { %v393_v3 = vpop.f32.mrf.mxu0 }
 0x2a3   :  { %v394_v4 = vadd.f32 %v443_v0, %v393_v3  ;;  %246 = vst.msk [vmem:[#allocation5] sm:$0xff] %vm245_vm1, %v244_v1 }
 0x2a4   :  { %408 = dma.vmem_to_hbm [thread:$0]  %s404_s6, 128, %s406_s29, [#allocation3]  }
 0x2a5   :  { %397 = vst.msk [vmem:[%s692_s10] sm:$0xff] %vm396_vm2, %v394_v4 }
 0x2a6   :  { %482 = dma.done.wait [#allocation3], 128  }
 0x2a7   :  { %483 = vsyncadd [#allocation3], 4294967168 }
 0x2a8   :  { %417 = vsyncpa [#allocation3], 1 }
 0x2a9   :  { %418 = vsyncpa [#allocation4], 1 }

</bundles_post_ra>
